<compile_context>
chip_gen: v6e
topology: v6e:2x2x1
jax: 0.10.0
libtpu: 0.0.40
codegen_flags: <defaults>
</compile_context>

<pallas_src>
import functools

import jax
import jax.numpy as jnp
from jax.experimental import pallas as pl
from jax.experimental.pallas import tpu as pltpu


def _round_up(v, m):
    return (v + m - 1) // m * m


def _cdiv(a, b):
    return (a + b - 1) // b


def _vmem_capacity_bytes():
    # Generation-aware VMEM cap (v5e/v6e: 128 MiB, v7x: 64 MiB per TC). Fall back
    # to the smallest (64 MiB) so the limit we hand Mosaic is always legal.
    try:
        return int(pltpu.get_tpu_info().vmem_capacity_bytes)
    except Exception:
        return 64 << 20


def _projection_kernel(x_ref, w1_ref, w2_ref, gamma_ref, beta_ref, o_ref,
                       g_ref, s_ref, *, eps, inv_d, tn, n_col, precision):
    j = pl.program_id(1)

    @pl.when(j == 0)
    def _():
        # linear1 (no bias): MXU matmul in the operands' native dtype, f32
        # accumulation, precision pinned explicitly.
        embed1 = jnp.dot(x_ref[...], w1_ref[...],
                         preferred_element_type=jnp.float32,
                         precision=precision)
        s_ref[...] = embed1                                   # residual slab (f32)
        # quick-gelu: x * sigmoid(1.702 x). Stored once per row tile in W2's
        # dtype so every column step feeds the MXU without re-casting.
        g_ref[...] = (embed1 * jax.nn.sigmoid(1.702 * embed1)).astype(g_ref.dtype)

    # linear2 column block: (tm, d_out) @ (d_out, tn) -> (tm, tn), accumulated
    # into the matching columns of the resident f32 row slab. Static slices only
    # (unrolled pl.when per column block) — no dynamic lane-offset stores.
    e2 = jnp.dot(g_ref[...], w2_ref[...],
                 preferred_element_type=jnp.float32, precision=precision)
    # TODO(synk): nn.Dropout(p) omitted (eval mode -> identity); training-mode
    # dropout would mask e2 here via pltpu.prng_seed + pltpu.prng_random_bits.
    if n_col == 1:
        s_ref[...] += e2
    else:
        for k in range(n_col):
            @pl.when(j == k)
            def _(k=k):
                s_ref[:, k * tn:(k + 1) * tn] += e2

    @pl.when(j == n_col - 1)
    def _():
        s = s_ref[...]
        # LayerNorm over the last dim; one-pass variance var = E[s^2] - mean^2.
        mean = jnp.sum(s, axis=-1, keepdims=True) * inv_d
        ex2 = jnp.sum(s * s, axis=-1, keepdims=True) * inv_d
        var = ex2 - mean * mean
        y = (s - mean) * jax.lax.rsqrt(var + eps)
        y = y * gamma_ref[...] + beta_ref[...]
        # TextEncoder tail: row L2-normalize. No epsilon — matches the PyTorch
        # reference (a genuinely zero row would be NaN there too). Ragged last
        # row tile: garbage rows are computed but their writes are dropped.
        ssq = jnp.sum(y * y, axis=-1, keepdims=True)
        o_ref[...] = (y * jax.lax.rsqrt(ssq)).astype(o_ref.dtype)


def projection_forward(x, w1, w2, gamma, beta, *, eps=1e-5, tm=None, tn=None,
                       use_bf16=False):
    """Fused Projection (linear1 -> quick-gelu -> linear2 -> +res -> LayerNorm)
    followed by the TextEncoder row L2-normalize.

    x:     (B, d_in)      EOS-token embeddings from the (external) text backbone.
    w1:    (d_in, d_out)  = linear1.weight.T
    w2:    (d_out, d_out) = linear2.weight.T
    gamma, beta: (d_out,) LayerNorm affine.
    """
    B, d_in = x.shape
    d_in_w, d_out = w1.shape
    assert d_in_w == d_in
    assert w2.shape == (d_out, d_out)
    assert gamma.shape == (d_out,) and beta.shape == (d_out,)
    # Lane-dense output and 128-divisible column tiles; LayerNorm over a padded
    # feature axis would be wrong, so d_out must already be 128-aligned.
    assert d_out % 128 == 0, "d_out must be a multiple of 128"

    if use_bf16:
        # bf16-native MXU path: full MXU rate and half the weight DMA bytes.
        x = x.astype(jnp.bfloat16)
        w1 = w1.astype(jnp.bfloat16)
        w2 = w2.astype(jnp.bfloat16)

    # Pin matmul precision explicitly: full f32 for f32 operands (the default MXU
    # precision for f32 operands is reduced), default for bf16 operands.
    if x.dtype == jnp.float32 and w1.dtype == jnp.float32:
        precision = jax.lax.Precision.HIGHEST
    else:
        precision = None

    vmem_cap = _vmem_capacity_bytes()

    # Row tile: 256 is the MXU-friendly ceiling that also fits v7x's 64 MiB; with
    # ample VMEM (v5e/v6e, 128 MiB) and a big batch a 512-row tile amortizes the
    # ~0.35us/step overhead better. Balanced ragged tiling (no wrapper pad/slice)
    # bounds padding waste by the sublane count instead of up to tm rows.
    if tm is None:
        tm = 512 if (vmem_cap >= (96 << 20) and B >= 512) else 256
    tm = max(16, _round_up(tm, 16))
    n_row = max(1, _cdiv(B, tm))
    tm_eff = _round_up(_cdiv(B, n_row), 16)
    n_row = _cdiv(B, tm_eff)

    # W2 column tile: full d_out when the block is small; otherwise halve (keeping
    # a multiple of 128 that divides d_out) so large heads fit v7x VMEM.
    w_itemsize = jnp.dtype(w2.dtype).itemsize
    if tn is None:
        tn = d_out
        while tn % 256 == 0 and d_out * tn * w_itemsize > (8 << 20):
            tn //= 2
    assert tn % 128 == 0 and d_out % tn == 0
    n_col = d_out // tn

    # gamma/beta cast once here (kernel sees f32 rows, no per-step cast).
    gamma2 = gamma.reshape(1, d_out).astype(jnp.float32)
    beta2 = beta.reshape(1, d_out).astype(jnp.float32)

    kernel = functools.partial(_projection_kernel, eps=eps, inv_d=1.0 / d_out,
                               tn=tn, n_col=n_col, precision=precision)

    # VMEM budget: W1/gamma/beta single-buffered (constant index map), W2 column
    # blocks double-buffered only when streamed, x/output tiles double-buffered,
    # plus the two scratch slabs and the in-flight f32 temporaries of the tail.
    x_itemsize = jnp.dtype(x.dtype).itemsize
    out_itemsize = x_itemsize
    w2_bufs = 1 if n_col == 1 else 2
    est = (d_in * d_out * jnp.dtype(w1.dtype).itemsize    # W1 (Buffered(1))
           + w2_bufs * d_out * tn * w_itemsize            # W2 column block(s)
           + 2 * d_out * 4                                # gamma + beta (f32)
           + 2 * tm_eff * d_in * x_itemsize               # x tile (2 bufs)
           + 2 * tm_eff * d_out * out_itemsize            # out tile (2 bufs)
           + tm_eff * d_out * (4 + w_itemsize)            # s_acc + gelu scratch
           + 4 * tm_eff * d_out * 4)                      # f32 temporaries (tail)
    vmem_limit = min(max(int(1.2 * est), 32 << 20), int(0.9 * vmem_cap))

    w2_spec_kwargs = {} if n_col > 1 else {"pipeline_mode": pl.Buffered(1)}

    out = pl.pallas_call(
        kernel,
        out_shape=jax.ShapeDtypeStruct((B, d_out), x.dtype),
        grid_spec=pltpu.PrefetchScalarGridSpec(
            num_scalar_prefetch=0,
            grid=(n_row, n_col),
            in_specs=[
                pl.BlockSpec((tm_eff, d_in), lambda i, j: (i, 0)),       # x rows
                pl.BlockSpec((d_in, d_out), lambda i, j: (0, 0),         # W1
                             pipeline_mode=pl.Buffered(1)),
                pl.BlockSpec((d_out, tn), lambda i, j: (0, j),           # W2 cols
                             **w2_spec_kwargs),
                pl.BlockSpec((1, d_out), lambda i, j: (0, 0),            # gamma
                             pipeline_mode=pl.Buffered(1)),
                pl.BlockSpec((1, d_out), lambda i, j: (0, 0),            # beta
                             pipeline_mode=pl.Buffered(1)),
            ],
            out_specs=pl.BlockSpec((tm_eff, d_out), lambda i, j: (i, 0)),
            scratch_shapes=[
                pltpu.VMEM((tm_eff, d_out), w2.dtype),      # quick_gelu(embed1)
                pltpu.VMEM((tm_eff, d_out), jnp.float32),   # embed1 + embed2
            ],
        ),
        compiler_params=pltpu.CompilerParams(
            # Rows shard across the two v7x TensorCores; the column axis carries a
            # resident output/accumulator so it must stay "arbitrary".
            # TODO(synk): in the weight-DMA-bound small-B regime on v7x both cores
            # pull a full W1/W2 copy; sharding columns instead would need a split
            # LayerNorm tail (cross-core reduction), not done here.
            dimension_semantics=("parallel", "arbitrary"),
            vmem_limit_bytes=vmem_limit,
        ),
    )(x, w1, w2, gamma2, beta2)

    return out


def reference_forward(x, w1, w2, gamma, beta, eps=1e-5):
    x = x.astype(jnp.float32)
    e1 = x @ w1.astype(jnp.float32)
    g = e1 * jax.nn.sigmoid(1.702 * e1)
    e2 = g @ w2.astype(jnp.float32)
    s = e1 + e2
    mean = jnp.mean(s, axis=-1, keepdims=True)
    var = jnp.mean((s - mean) ** 2, axis=-1, keepdims=True)
    y = (s - mean) / jnp.sqrt(var + eps) * gamma + beta
    return y / jnp.linalg.norm(y, axis=-1, keepdims=True)


if __name__ == "__main__":
    # Small shapes: B plays the role of "number of EOS tokens" coming out of the
    # (external) text backbone; B=20 exercises the ragged last row tile.
    B, d_in, d_out = 20, 64, 128

    key = jax.random.PRNGKey(0)
    kx, k1, k2, kg, kb = jax.random.split(key, 5)

    x = jax.random.normal(kx, (B, d_in), dtype=jnp.float32)
    # PyTorch nn.Linear stores (d_out, d_in); we pass the transposed layout.
    w1 = jax.random.normal(k1, (d_in, d_out), dtype=jnp.float32) * (d_in ** -0.5)
    w2 = jax.random.normal(k2, (d_out, d_out), dtype=jnp.float32) * (d_out ** -0.5)
    gamma = 1.0 + 0.01 * jax.random.normal(kg, (d_out,), dtype=jnp.float32)
    beta = 0.01 * jax.random.normal(kb, (d_out,), dtype=jnp.float32)

    # f32 path (explicit HIGHEST matmul precision).
    out = jax.block_until_ready(projection_forward(x, w1, w2, gamma, beta))
    ref = reference_forward(x, w1, w2, gamma, beta)
    assert out.shape == (B, d_out)
    assert jnp.allclose(out, ref, atol=2e-4, rtol=2e-4), "f32 path mismatch"

    # bf16-native MXU fast path (half the weight DMA); looser tolerance.
    out_bf16 = jax.block_until_ready(
        projection_forward(x, w1, w2, gamma, beta, use_bf16=True))
    assert jnp.allclose(out_bf16.astype(jnp.float32), ref,
                        atol=5e-2, rtol=5e-2), "bf16 path mismatch"

    # Exercise the streamed-W2 column path (n_col > 1) on a wider head.
    d_out2 = 256
    k1b, k2b = jax.random.split(k1)
    w1b = jax.random.normal(k1b, (d_in, d_out2), dtype=jnp.float32) * (d_in ** -0.5)
    w2b = jax.random.normal(k2b, (d_out2, d_out2), dtype=jnp.float32) * (d_out2 ** -0.5)
    gammab = 1.0 + 0.01 * jax.random.normal(kg, (d_out2,), dtype=jnp.float32)
    betab = 0.01 * jax.random.normal(kb, (d_out2,), dtype=jnp.float32)
    out2 = jax.block_until_ready(
        projection_forward(x, w1b, w2b, gammab, betab, tn=128))
    ref2 = reference_forward(x, w1b, w2b, gammab, betab)
    assert jnp.allclose(out2, ref2, atol=2e-4, rtol=2e-4), "tiled-W2 path mismatch"

    print("KERNEL_OK")
</pallas_src>

<mosaic_0001>
module attributes {stable_mosaic.version = 11 : i64} {
  func.func @_projection_kernel(%arg0: i32, %arg1: i32, %arg2: memref<32x64xf32, #tpu.memory_space<vmem>>, %arg3: memref<64x128xf32, #tpu.memory_space<vmem>>, %arg4: memref<128x128xf32, #tpu.memory_space<vmem>>, %arg5: memref<1x128xf32, #tpu.memory_space<vmem>>, %arg6: memref<1x128xf32, #tpu.memory_space<vmem>>, %arg7: memref<32x128xf32, #tpu.memory_space<vmem>>, %arg8: memref<32x128xf32, #tpu.memory_space<vmem>>, %arg9: memref<32x128xf32, #tpu.memory_space<vmem>>) attributes {dimension_semantics = [#tpu.dimension_semantics<parallel>, #tpu.dimension_semantics<arbitrary>], iteration_bounds = array<i64: 1, 1>, scalar_prefetch = 0 : i64, scratch_operands = 2 : i64, tpu.core_type = #tpu.core_type<tc>, window_params = [{transform_indices = @transform_0, window_bounds = array<i64: 32, 64>}, {pipeline_mode = #tpu.pipeline_mode<synchronous>, transform_indices = @transform_1, window_bounds = array<i64: 64, 128>}, {pipeline_mode = #tpu.pipeline_mode<synchronous>, transform_indices = @transform_2, window_bounds = array<i64: 128, 128>}, {pipeline_mode = #tpu.pipeline_mode<synchronous>, transform_indices = @transform_3, window_bounds = array<i64: 1, 128>}, {pipeline_mode = #tpu.pipeline_mode<synchronous>, transform_indices = @transform_4, window_bounds = array<i64: 1, 128>}, {transform_indices = @transform_5, window_bounds = array<i64: 32, 128>}]} {
    %c0_i32 = arith.constant 0 : i32
    %0 = arith.cmpi eq, %arg1, %c0_i32 : i32
    %1 = arith.extui %0 : i1 to i32
    %c0_i32_0 = arith.constant 0 : i32
    %2 = arith.cmpi ne, %1, %c0_i32_0 : i32
    scf.if %2 {
      %c0_10 = arith.constant 0 : index
      %c0_11 = arith.constant 0 : index
      %12 = vector.load %arg2[%c0_10, %c0_11] : memref<32x64xf32, #tpu.memory_space<vmem>>, vector<32x64xf32>
      %c0_12 = arith.constant 0 : index
      %c0_13 = arith.constant 0 : index
      %13 = vector.load %arg3[%c0_12, %c0_13] : memref<64x128xf32, #tpu.memory_space<vmem>>, vector<64x128xf32>
      %cst_14 = arith.constant dense<0.000000e+00> : vector<32x128xf32>
      %14 = tpu.matmul %12, %13, %cst_14 {dimension_numbers = #tpu.dot_dimension_numbers<[1], [0], [0], [1], [0, 0, 1, 1], [], []>, precision = #tpu.contract_precision<fp32>} : vector<32x64xf32>, vector<64x128xf32>, vector<32x128xf32> -> vector<32x128xf32>
      %c0_15 = arith.constant 0 : index
      %c0_16 = arith.constant 0 : index
      %15 = vector.load %arg9[%c0_15, %c0_16] : memref<32x128xf32, #tpu.memory_space<vmem>>, vector<32x128xf32>
      tpu.vector_store %arg9[%c0_15, %c0_16], %14 {strides = array<i32>} : memref<32x128xf32, #tpu.memory_space<vmem>>, vector<32x128xf32>,
      %cst_17 = arith.constant 1.702000e+00 : f32
      %16 = vector.broadcast %cst_17 : f32 to vector<32x128xf32>
      %17 = arith.mulf %16, %14 : vector<32x128xf32>
      %18 = arith.negf %17 : vector<32x128xf32>
      %19 = math.exp %18 : vector<32x128xf32>
      %cst_18 = arith.constant 1.000000e+00 : f32
      %20 = vector.broadcast %cst_18 : f32 to vector<32x128xf32>
      %21 = arith.addf %20, %19 : vector<32x128xf32>
      %22 = arith.divf %20, %21 : vector<32x128xf32>
      %23 = arith.mulf %14, %22 : vector<32x128xf32>
      %c0_19 = arith.constant 0 : index
      %c0_20 = arith.constant 0 : index
      %24 = vector.load %arg8[%c0_19, %c0_20] : memref<32x128xf32, #tpu.memory_space<vmem>>, vector<32x128xf32>
      tpu.vector_store %arg8[%c0_19, %c0_20], %23 {strides = array<i32>} : memref<32x128xf32, #tpu.memory_space<vmem>>, vector<32x128xf32>,
    } else {
    }
    %c0 = arith.constant 0 : index
    %c0_1 = arith.constant 0 : index
    %3 = vector.load %arg8[%c0, %c0_1] : memref<32x128xf32, #tpu.memory_space<vmem>>, vector<32x128xf32>
    %c0_2 = arith.constant 0 : index
    %c0_3 = arith.constant 0 : index
    %4 = vector.load %arg4[%c0_2, %c0_3] : memref<128x128xf32, #tpu.memory_space<vmem>>, vector<128x128xf32>
    %cst = arith.constant dense<0.000000e+00> : vector<32x128xf32>
    %5 = tpu.matmul %3, %4, %cst {dimension_numbers = #tpu.dot_dimension_numbers<[1], [0], [0], [1], [0, 0, 1, 1], [], []>, precision = #tpu.contract_precision<fp32>} : vector<32x128xf32>, vector<128x128xf32>, vector<32x128xf32> -> vector<32x128xf32>
    %c0_4 = arith.constant 0 : index
    %c0_5 = arith.constant 0 : index
    %6 = vector.load %arg9[%c0_4, %c0_5] : memref<32x128xf32, #tpu.memory_space<vmem>>, vector<32x128xf32>
    %7 = arith.addf %6, %5 : vector<32x128xf32>
    %c0_6 = arith.constant 0 : index
    %c0_7 = arith.constant 0 : index
    %8 = vector.load %arg9[%c0_6, %c0_7] : memref<32x128xf32, #tpu.memory_space<vmem>>, vector<32x128xf32>
    tpu.vector_store %arg9[%c0_6, %c0_7], %7 {strides = array<i32>} : memref<32x128xf32, #tpu.memory_space<vmem>>, vector<32x128xf32>,
    %c0_i32_8 = arith.constant 0 : i32
    %9 = arith.cmpi eq, %arg1, %c0_i32_8 : i32
    %10 = arith.extui %9 : i1 to i32
    %c0_i32_9 = arith.constant 0 : i32
    %11 = arith.cmpi ne, %10, %c0_i32_9 : i32
    scf.if %11 {
      %c0_10 = arith.constant 0 : index
      %c0_11 = arith.constant 0 : index
      %12 = vector.load %arg9[%c0_10, %c0_11] : memref<32x128xf32, #tpu.memory_space<vmem>>, vector<32x128xf32>
      %cst_12 = arith.constant dense<0.000000e+00> : vector<32xf32>
      %13 = vector.multi_reduction <add>, %12, %cst_12 [1] : vector<32x128xf32> to vector<32xf32>
      %14 = vector.shape_cast %13 : vector<32xf32> to vector<32x1xf32>
      %cst_13 = arith.constant 7.812500e-03 : f32
      %15 = vector.broadcast %cst_13 : f32 to vector<32x1xf32>
      %16 = arith.mulf %14, %15 : vector<32x1xf32>
      %17 = arith.mulf %12, %12 : vector<32x128xf32>
      %cst_14 = arith.constant dense<0.000000e+00> : vector<32xf32>
      %18 = vector.multi_reduction <add>, %17, %cst_14 [1] : vector<32x128xf32> to vector<32xf32>
      %19 = vector.shape_cast %18 : vector<32xf32> to vector<32x1xf32>
      %cst_15 = arith.constant 7.812500e-03 : f32
      %20 = vector.broadcast %cst_15 : f32 to vector<32x1xf32>
      %21 = arith.mulf %19, %20 : vector<32x1xf32>
      %22 = arith.mulf %16, %16 : vector<32x1xf32>
      %23 = arith.subf %21, %22 : vector<32x1xf32>
      %24 = vector.broadcast %16 : vector<32x1xf32> to vector<32x128xf32>
      %25 = arith.subf %12, %24 : vector<32x128xf32>
      %cst_16 = arith.constant 9.99999974E-6 : f32
      %26 = vector.broadcast %cst_16 : f32 to vector<32x1xf32>
      %27 = arith.addf %23, %26 : vector<32x1xf32>
      %28 = math.rsqrt %27 : vector<32x1xf32>
      %29 = vector.broadcast %28 : vector<32x1xf32> to vector<32x128xf32>
      %30 = arith.mulf %25, %29 : vector<32x128xf32>
      %c0_17 = arith.constant 0 : index
      %c0_18 = arith.constant 0 : index
      %31 = vector.load %arg5[%c0_17, %c0_18] : memref<1x128xf32, #tpu.memory_space<vmem>>, vector<1x128xf32>
      %32 = vector.broadcast %31 : vector<1x128xf32> to vector<32x128xf32>
      %33 = arith.mulf %30, %32 : vector<32x128xf32>
      %c0_19 = arith.constant 0 : index
      %c0_20 = arith.constant 0 : index
      %34 = vector.load %arg6[%c0_19, %c0_20] : memref<1x128xf32, #tpu.memory_space<vmem>>, vector<1x128xf32>
      %35 = vector.broadcast %34 : vector<1x128xf32> to vector<32x128xf32>
      %36 = arith.addf %33, %35 : vector<32x128xf32>
      %37 = arith.mulf %36, %36 : vector<32x128xf32>
      %cst_21 = arith.constant dense<0.000000e+00> : vector<32xf32>
      %38 = vector.multi_reduction <add>, %37, %cst_21 [1] : vector<32x128xf32> to vector<32xf32>
      %39 = vector.shape_cast %38 : vector<32xf32> to vector<32x1xf32>
      %40 = math.rsqrt %39 : vector<32x1xf32>
      %41 = vector.broadcast %40 : vector<32x1xf32> to vector<32x128xf32>
      %42 = arith.mulf %36, %41 : vector<32x128xf32>
      %c0_22 = arith.constant 0 : index
      %c0_23 = arith.constant 0 : index
      %43 = vector.load %arg7[%c0_22, %c0_23] : memref<32x128xf32, #tpu.memory_space<vmem>>, vector<32x128xf32>
      tpu.vector_store %arg7[%c0_22, %c0_23], %42 {strides = array<i32>} : memref<32x128xf32, #tpu.memory_space<vmem>>, vector<32x128xf32>,
    } else {
    }
    return
  }
  func.func @transform_0(%arg0: i32, %arg1: i32) -> (i32, i32) {
    %c0_i32 = arith.constant 0 : i32
    %c0_i32_0 = arith.constant 0 : i32
    return %arg0, %c0_i32 : i32, i32
  }
  func.func @transform_1(%arg0: i32, %arg1: i32) -> (i32, i32) {
    %c0_i32 = arith.constant 0 : i32
    %c0_i32_0 = arith.constant 0 : i32
    %c0_i32_1 = arith.constant 0 : i32
    return %c0_i32, %c0_i32_0 : i32, i32
  }
  func.func @transform_2(%arg0: i32, %arg1: i32) -> (i32, i32) {
    %c0_i32 = arith.constant 0 : i32
    %c0_i32_0 = arith.constant 0 : i32
    return %c0_i32, %arg1 : i32, i32
  }
  func.func @transform_3(%arg0: i32, %arg1: i32) -> (i32, i32) {
    %c0_i32 = arith.constant 0 : i32
    %c0_i32_0 = arith.constant 0 : i32
    %c0_i32_1 = arith.constant 0 : i32
    return %c0_i32, %c0_i32_0 : i32, i32
  }
  func.func @transform_4(%arg0: i32, %arg1: i32) -> (i32, i32) {
    %c0_i32 = arith.constant 0 : i32
    %c0_i32_0 = arith.constant 0 : i32
    %c0_i32_1 = arith.constant 0 : i32
    return %c0_i32, %c0_i32_0 : i32, i32
  }
  func.func @transform_5(%arg0: i32, %arg1: i32) -> (i32, i32) {
    %c0_i32 = arith.constant 0 : i32
    %c0_i32_0 = arith.constant 0 : i32
    return %arg0, %c0_i32 : i32, i32
  }
}

</mosaic_0001>

<bundles_post_ra>
// kernel: tpu_custom_call.1
= control target key start
LH: loop header
LB: loop body
LE: loop exit
PB: predicated region body
PF: predicated region fallthrough
CT: control target
= control target key end

     0   :  { %10 = vsyncpa [#allocation5], 0  ;;  %s3091_s0 = inlined_call_operand.hbm [shape: f32[20,64], index: 0, kind: input, shape index: {}]   ;;  %s3092_s1 = inlined_call_operand.hbm [shape: f32[64,128], index: 1, kind: input, shape index: {}]   ;;  %s3093_s2 = inlined_call_operand.hbm [shape: f32[128,128], index: 2, kind: input, shape index: {}]   ;;  %s3094_s3 = inlined_call_operand.vmem [shape: f32[1,128], index: 3, kind: input, shape index: {}]   ;;  %s3095_s4 = inlined_call_operand.vmem [shape: f32[1,128], index: 4, kind: input, shape index: {}]   ;;  %s3096_s5 = inlined_call_operand.hbm [shape: f32[20,128], index: 5, kind: output, shape index: {}]  }
   0x1   :  { %11 = vsyncpa [#allocation8], 0 }
   0x2   :  { %12 = vsyncpa [#allocation6], 0 }
   0x3   :  { %17 = vsyncadd [#allocation5], 128  ;;  %s2404_s18 = smov [#allocation7]   ;;  %s2405_s20 = smov [#allocation4]  }
   0x4   :  { %s30_s19 = sshll.u32 %s2404_s18, 4  ;;  %s18_s21 = sshll.u32 %s2405_s20, 4  ;;  %s31_s19 = int_to_ptr.vmem [resolvable:$true] %s30_s19  ;;  %s19_s21 = int_to_ptr.vmem [resolvable:$true] %s18_s21 }
   0x5   :  { %s2326_s22 = scalar_lea.vmem %s31_s19, 1024  ;;  %p2331_p1 = scmp.lt.s32.totalorder %s31_s19, %s31_s19 }
   0x6   :  { %p2327_p0 = scmp.ne.s32.totalorder %s31_s19, %s2326_s22  ;;  %p2332_p2 = scmp.lt.s32.totalorder %s2326_s22, %s2326_s22 }
   0x8   :  { %p2333_p3 = por %p2332_p2, %p2331_p1 }
   0xa   :  { %p2334_p4 = pnand %p2333_p3, %p2327_p0 }
   0xc   :  { %2337 = shalt.err (!%p2334_p4)
}
   0xd   :  { %s2406_s23 = smov 128   ;;  %s2407_s24 = smov 8  }
   0xe   :  { %36 = dma.hbm_to_vmem [thread:$0]  %s3092_s1, 1024, %s31_s19, [#allocation8], %s2406_s23, %s2406_s23, %s2407_s24  }
   0xf   :  { %s2346_s27 = scalar_lea.vmem %s19_s21, 384  ;;  %s2350_s28 = scalar_lea.vmem %s19_s21, 512 }
  0x10   :  { %p2347_p5 = scmp.ne.s32.totalorder %s19_s21, %s2346_s27  ;;  %p2351_p6 = scmp.lt.s32.totalorder %s19_s21, %s19_s21 }
  0x11   :  { %p2352_p7 = scmp.lt.s32.totalorder %s2350_s28, %s2346_s27 }
  0x13   :  { %p2353_p8 = por %p2352_p7, %p2351_p6 }
  0x15   :  { %p2354_p9 = pnand %p2353_p8, %p2347_p5 }
  0x17   :  { %2357 = shalt.err (!%p2354_p9)
}
  0x18   :  { %24 = dma.hbm_to_vmem [thread:$0]  %s3091_s0, 384, %s19_s21, [#allocation5], %s2406_s23, %s2406_s23, %s2407_s24  }
  0x19   :  { %s2408_s6 = smov [#allocation9]  }
  0x1a   :  { %s42_s7 = sshll.u32 %s2408_s6, 4  ;;  %s43_s7 = int_to_ptr.vmem [resolvable:$true] %s42_s7 }
  0x1b   :  { %s2366_s8 = scalar_lea.vmem %s43_s7, 2048  ;;  %p2371_p11 = scmp.lt.s32.totalorder %s43_s7, %s43_s7 }
  0x1c   :  { %p2367_p10 = scmp.ne.s32.totalorder %s43_s7, %s2366_s8  ;;  %p2372_p12 = scmp.lt.s32.totalorder %s2366_s8, %s2366_s8 }
  0x1e   :  { %p2373_p13 = por %p2372_p12, %p2371_p11 }
  0x20   :  { %p2374_p0 = pnand %p2373_p13, %p2367_p10 }
  0x22   :  { %2377 = shalt.err (!%p2374_p0)
}
  0x23   :  { %48 = dma.hbm_to_vmem [thread:$0]  %s3093_s2, 2048, %s43_s7, [#allocation8], %s2406_s23, %s2406_s23, %s2407_s24  }
  0x24   :  { %2398 = dma.done.wait [#allocation5], 512  }
  0x25   :  { %2399 = vsyncadd [#allocation5], 4294966784 }
  0x26   :  { %2400 = dma.done.wait [#allocation8], 3072  }
  0x27   :  { %2401 = vsyncadd [#allocation8], 4294964224  ;;  %v77_v0 = vld [vmem:[#allocation7 + $0x38] sm:$0xff]  ;;  %v76_v1 = vld [vmem:[#allocation7 + $0x30] sm:$0xff]  ;;  %vm78_vm0 = vcmask 523264  }
  0x28   :  { %v75_v2 = vld [vmem:[#allocation7 + $0x28] sm:$0xff]  ;;  %v2458_v3 = vand.u32 4294901760, %v77_v0  ;;  %v2460_v4 = vand.u32 4294901760, %v76_v1  ;;  %v74_v6 = vld [vmem:[#allocation7 + $0x20] sm:$0xff]  ;;  %v73_v7 = vld [vmem:[#allocation7 + $0x18] sm:$0xff] }
  0x29   :  { %v2462_v5 = vand.u32 4294901760, %v75_v2  ;;  %v72_v8 = vld [vmem:[#allocation7 + $0x10] sm:$0xff]  ;;  %v2464_v9 = vand.u32 4294901760, %v74_v6  ;;  %v2466_v10 = vand.u32 4294901760, %v73_v7  ;;  %v71_v12 = vld [vmem:[#allocation7 + $0x8] sm:$0xff]  ;;  %v70_v13 = vld [vmem:[#allocation7] sm:$0xff] }
  0x2a   :  { %v2468_v11 = vand.u32 4294901760, %v72_v8  ;;  %v66_v14 = vld [vmem:[#allocation4] sm:$0xff]  ;;  %1920 = vmatprep.subr.mxu0 %v2458_v3  ;;  %v2472_v15 = vsub.f32 %v77_v0, %v2458_v3  ;;  %v2475_v16 = vsub.f32 %v76_v1, %v2460_v4  ;;  %v2477_v17 = vand.u32 4294901760, %v71_v12  ;;  %v67_v19 = vld [vmem:[#allocation4 + $0x8] sm:$0xff]  ;;  %v68_v37 = vld [vmem:[#allocation4 + $0x10] sm:$0xff] }
  0x2b   :  { %v2480_v18 = vsub.f32 %v75_v2, %v2462_v5  ;;  %1921 = vmatpush3.msra.mxu0 %v2458_v3  ;;  %v2483_v20 = vand.u32 4294901760, %v70_v13  ;;  %v2486_v21 = vsub.f32 %v74_v6, %v2464_v9  ;;  %v80_v22 = vsel %vm78_vm0, %v66_v14, 0  ;;  %v69_v42 = vld [vmem:[#allocation4 + $0x18] sm:$0xff] }
  0x2c   :  { %v2490_v23 = vsub.f32 %v73_v7, %v2466_v10  ;;  %1922 = vmatprep.subr.mxu0 %v2460_v4  ;;  %v2494_v24 = vand.u32 4294901760, %v2472_v15  ;;  %v2497_v25 = vand.u32 4294901760, %v2475_v16  ;;  %v2502_v27 = vand.u32 4294901760, %v80_v22 }
  0x2d   :  { %v2500_v26 = vand.u32 4294901760, %v2480_v18  ;;  %1923 = vmatpush3.msra.mxu0 %v2460_v4  ;;  %v2506_v28 = vand.u32 4294901760, %v2486_v21  ;;  %v83_v30 = vsel %vm78_vm0, %v67_v19, 0  ;;  %v2513_v31 = vsub.f32 %v72_v8, %v2468_v11 }
  0x2e   :  { %v2509_v29 = vand.u32 4294901760, %v2490_v23  ;;  %1924 = vmatprep.subr.mxu0 %v2462_v5  ;;  %v224_v32 = vsub.f32 %v2472_v15, %v2494_v24  ;;  %v231_v33 = vsub.f32 %v2475_v16, %v2497_v25  ;;  %v2523_v35 = vsub.f32 %v80_v22, %v2502_v27  ;;  %1958 = vmatprep.mubr.f32.mxu1 %v2502_v27 }
  0x2f   :  { %v238_v34 = vsub.f32 %v2480_v18, %v2500_v26  ;;  %1925 = vmatpush3.msra.mxu0 %v2462_v5  ;;  %v2526_v36 = vand.u32 4294901760, %v83_v30  ;;  %v245_v40 = vsub.f32 %v2486_v21, %v2506_v28  ;;  %v2540_v46 = vand.u32 4294901760, %v2513_v31 }
  0x30   :  { %1926 = vmatprep.subr.mxu0 %v2464_v9  ;;  %v225_v38 = vand.u32 4294901760, %v224_v32  ;;  %v232_v39 = vand.u32 4294901760, %v231_v33  ;;  %v166_v41 = vand.u32 4294901760, %v2523_v35  ;;  %v252_v44 = vsub.f32 %v2490_v23, %v2509_v29  ;;  %v811_v32 = vld [vmem:[#allocation9 + $0x50] sm:$0xff] }
  0x31   :  { %1927 = vmatpush3.msra.mxu0 %v2464_v9  ;;  %v239_v43 = vand.u32 4294901760, %v238_v34  ;;  %v2537_v45 = vsub.f32 %v83_v30, %v2526_v36  ;;  %v2547_v48 = vsub.f32 %v71_v12, %v2477_v17  ;;  %v2550_v49 = vsub.f32 %v70_v13, %v2483_v20 }
  0x32   :  { %1928 = vmatprep.subr.mxu0 %v2466_v10  ;;  %1942 = vmatprep.subr.mxu1 %v225_v38  ;;  %v167_v47 = vsub.f32 %v2523_v35, %v166_v41  ;;  %v86_v50 = vsel %vm78_vm0, %v68_v37, 0  ;;  %v89_v53 = vsel %vm78_vm0, %v69_v42, 0  ;;  %v246_v54 = vand.u32 4294901760, %v245_v40 }
  0x33   :  { %1929 = vmatpush3.msra.mxu0 %v2466_v10  ;;  %1943 = vmatpush3.msra.mxu1 %v225_v38  ;;  %v176_v51 = vand.u32 4294901760, %v2537_v45  ;;  %v2555_v52 = vand.u32 4294901760, %v86_v50  ;;  %v2560_v55 = vand.u32 4294901760, %v2547_v48  ;;  %v2562_v56 = vand.u32 4294901760, %v89_v53  ;;  %v810_v38 = vld [vmem:[#allocation9 + $0x48] sm:$0xff] }
  0x34   :  { %1930 = vmatprep.subr.mxu0 %v2468_v11  ;;  %1944 = vmatprep.subr.mxu1 %v232_v39  ;;  %v259_v58 = vsub.f32 %v2513_v31, %v2540_v46  ;;  %v2571_v59 = vand.u32 4294901760, %v2550_v49  ;;  %v168_v60 = vand.u32 4294901760, %v167_v47  ;;  %v253_v61 = vand.u32 4294901760, %v252_v44  ;;  %v809_v44 = vld [vmem:[#allocation9 + $0x40] sm:$0xff] }
  0x35   :  { %1931 = vmatpush3.msra.mxu0 %v2468_v11  ;;  %1945 = vmatpush3.msra.mxu1 %v232_v39  ;;  %v177_v57 = vsub.f32 %v2537_v45, %v176_v51  ;;  %v2575_v62 = vsub.f32 %v86_v50, %v2555_v52  ;;  %v266_v0 = vsub.f32 %v2547_v48, %v2560_v55  ;;  %v2741_v42 = vand.u32 4294901760, %v810_v38  ;;  %v808_v50 = vld [vmem:[#allocation9 + $0x38] sm:$0xff] }
  0x36   :  { %1932 = vmatprep.subr.mxu0 %v2477_v17  ;;  %1946 = vmatprep.subr.mxu1 %v239_v43  ;;  %v2582_v1 = vsub.f32 %v89_v53, %v2562_v56  ;;  %v260_v2 = vand.u32 4294901760, %v259_v58  ;;  %v273_v6 = vsub.f32 %v2550_v49, %v2571_v59 }
  0x37   :  { %1933 = vmatpush3.msra.mxu0 %v2477_v17  ;;  %1947 = vmatpush3.msra.mxu1 %v239_v43  ;;  %v178_v63 = vand.u32 4294901760, %v177_v57  ;;  %v186_v7 = vand.u32 4294901760, %v2575_v62  ;;  %v267_v8 = vand.u32 4294901760, %v266_v0  ;;  %v2752_v47 = vsub.f32 %v810_v38, %v2741_v42 }
  0x38   :  { %1934 = vmatprep.subr.mxu0 %v2483_v20  ;;  %1948 = vmatprep.subr.mxu1 %v246_v54  ;;  %v196_v12 = vand.u32 4294901760, %v2582_v1  ;;  %v274_v13 = vand.u32 4294901760, %v273_v6 }
  0x39   :  { %1935 = vmatpush3.msra.mxu0 %v2483_v20  ;;  %1949 = vmatpush3.msra.mxu1 %v246_v54  ;;  %v187_v14 = vsub.f32 %v2575_v62, %v186_v7  ;;  %v2768_v54 = vand.u32 4294901760, %v808_v50 }
  0x3a   :  { %1936 = vmatprep.mubr.f32.mxu0 %v168_v60  ;;  %1950 = vmatprep.subr.mxu1 %v253_v61 }
  0x3b   :  { %1964 = vmatprep.subr.mxu0 %v2472_v15  ;;  %1937 = vmatmul.mubr.f32.vlgmr.msra.gmra.mxu0 %v178_v63  ;;  %v2778_v60 = vsub.f32 %v808_v50, %v2768_v54 }
  0x3c   :  { %1951 = vmatpush3.msra.mxu1 %v253_v61  ;;  %1965 = vmatpush3.msra.mxu0 %v2472_v15  ;;  %v197_v15 = vsub.f32 %v2582_v1, %v196_v12 }
  0x3d   :  { %1952 = vmatprep.subr.mxu1 %v260_v2  ;;  %1966 = vmatprep.subr.mxu0 %v2475_v16 }
  0x3e   :  { %1953 = vmatpush3.msra.mxu1 %v260_v2  ;;  %1967 = vmatpush3.msra.mxu0 %v2475_v16  ;;  %v188_v16 = vand.u32 4294901760, %v187_v14 }
  0x3f   :  { %1954 = vmatprep.subr.mxu1 %v267_v8  ;;  %1968 = vmatprep.subr.mxu0 %v2480_v18 }
  0x40   :  { %1955 = vmatpush3.msra.mxu1 %v267_v8  ;;  %1969 = vmatpush3.msra.mxu0 %v2480_v18  ;;  %v198_v18 = vand.u32 4294901760, %v197_v15 }
  0x41   :  { %1956 = vmatprep.subr.mxu1 %v274_v13  ;;  %1970 = vmatprep.subr.mxu0 %v2486_v21 }
  0x42   :  { %1957 = vmatpush3.msra.mxu1 %v274_v13  ;;  %1971 = vmatpush3.msra.mxu0 %v2486_v21  ;;  %v813_v21 = vld [vmem:[#allocation9 + $0x60] sm:$0xff] }
  0x43   :  { %1959 = vmatmul.mubr.f32.vlgmr.msra.gmra.mxu1 %v2526_v36  ;;  %1972 = vmatprep.subr.mxu0 %v2490_v23 }
  0x44   :  { %1986 = vmatprep.subr.mxu1 %v2458_v3  ;;  %1973 = vmatpush3.msra.mxu0 %v2490_v23 }
  0x45   :  { %1987 = vmatpush3.msra.mxu1 %v2458_v3  ;;  %1974 = vmatprep.subr.mxu0 %v2513_v31 }
  0x46   :  { %1988 = vmatprep.subr.mxu1 %v2460_v4  ;;  %1939 = vmatprep.mubr.f32.mxu0 %v188_v16  ;;  %v804_v16 = vld [vmem:[#allocation9 + $0x18] sm:$0xff] }
  0x47   :  { %1975 = vmatpush3.msra.mxu0 %v2513_v31  ;;  %1989 = vmatpush3.msra.mxu1 %v2460_v4 }
  0x48   :  { %1940 = vmatmul.mubr.f32.gmra.mxu0 %v198_v18  ;;  %1976 = vmatprep.subr.mxu0 %v2547_v48 }
  0x49   :  { %1990 = vmatprep.subr.mxu1 %v2462_v5  ;;  %1977 = vmatpush3.msra.mxu0 %v2547_v48  ;;  %v2754_v48 = vand.u32 4294901760, %v809_v44 }
  0x4a   :  { %1991 = vmatpush3.msra.mxu1 %v2462_v5  ;;  %1978 = vmatprep.subr.mxu0 %v2550_v49 }
  0x4b   :  { %1992 = vmatprep.subr.mxu1 %v2464_v9  ;;  %1979 = vmatpush3.msra.mxu0 %v2550_v49  ;;  %v2766_v53 = vsub.f32 %v809_v44, %v2754_v48 }
  0x4c   :  { %1980 = vmatprep.mubr.f32.mxu0 %v2523_v35  ;;  %1993 = vmatpush3.msra.mxu1 %v2464_v9 }
  0x4d   :  { %1961 = vmatprep.mubr.f32.mxu1 %v2555_v52  ;;  %1981 = vmatmul.mubr.f32.vlgmr.msra.gmra.mxu0 %v2537_v45 }
  0x4e   :  { %1994 = vmatprep.subr.mxu1 %v2466_v10  ;;  %2008 = vmatprep.subr.mxu0 %v2494_v24 }
  0x4f   :  { %1962 = vmatmul.mubr.f32.gmra.mxu1 %v2562_v56  ;;  %2009 = vmatpush3.msra.mxu0 %v2494_v24 }
  0x50   :  { %1995 = vmatpush3.msra.mxu1 %v2466_v10  ;;  %2010 = vmatprep.subr.mxu0 %v2497_v25 }
  0x51   :  { %1996 = vmatprep.subr.mxu1 %v2468_v11  ;;  %1983 = vmatprep.mubr.f32.mxu0 %v2575_v62  ;;  %v806_v62 = vld [vmem:[#allocation9 + $0x28] sm:$0xff] }
  0x52   :  { %1997 = vmatpush3.msra.mxu1 %v2468_v11  ;;  %2011 = vmatpush3.msra.mxu0 %v2497_v25  ;;  %v2709_v25 = vand.u32 4294901760, %v813_v21  ;;  %v2789_v2 = vand.u32 4294901760, %v806_v62 }
  0x53   :  { %1984 = vmatmul.mubr.f32.gmra.mxu0 %v2582_v1  ;;  %1998 = vmatprep.subr.mxu1 %v2477_v17  ;;  %v2787_v1 = vand.u32 4294901760, %v2778_v60 }
  0x54   :  { %2012 = vmatprep.subr.mxu0 %v2500_v26  ;;  %1999 = vmatpush3.msra.mxu1 %v2477_v17  ;;  %v2719_v30 = vsub.f32 %v813_v21, %v2709_v25  ;;  %v2799_v13 = vsub.f32 %v806_v62, %v2789_v2 }
  0x55   :  { %2013 = vmatpush3.msra.mxu0 %v2500_v26  ;;  %2000 = vmatprep.subr.mxu1 %v2483_v20  ;;  %v812_v26 = vld [vmem:[#allocation9 + $0x58] sm:$0xff]  ;;  %3143 = vst [vmem:[#allocation22_spill] sm:$0xff] %v2787_v1 }
  0x56   :  { %2014 = vmatprep.subr.mxu0 %v2506_v28  ;;  %2001 = vmatpush3.msra.mxu1 %v2483_v20  ;;  %v2722_v31 = vand.u32 4294901760, %v812_v26  ;;  %v2728_v35 = vand.u32 4294901760, %v2719_v30 }
  0x57   :  { %2002 = vmatprep.mubr.f32.mxu1 %v166_v41  ;;  %2015 = vmatpush3.msra.mxu0 %v2506_v28 }
  0x58   :  { %2003 = vmatmul.mubr.f32.vlgmr.msra.gmra.mxu1 %v176_v51  ;;  %2016 = vmatprep.subr.mxu0 %v2509_v29  ;;  %3138 = vst [vmem:[#allocation17_spill] sm:$0xff] %v2728_v35  ;;  %v2733_v37 = vsub.f32 %v812_v26, %v2722_v31  ;;  %v963_v40 = vsub.f32 %v2719_v30, %v2728_v35 }
  0x59   :  { %2030 = vmatprep.subr.mxu1 %v2458_v3  ;;  %2017 = vmatpush3.msra.mxu0 %v2509_v29 }
  0x5a   :  { %2031 = vmatpush3.msra.mxu1 %v2458_v3  ;;  %2018 = vmatprep.subr.mxu0 %v2540_v46  ;;  %v816_v3 = vld [vmem:[#allocation9 + $0x78] sm:$0xff]  ;;  %v2745_v43 = vand.u32 4294901760, %v2733_v37  ;;  %v964_v45 = vand.u32 4294901760, %v963_v40 }
  0x5b   :  { %2032 = vmatprep.subr.mxu1 %v2460_v4  ;;  %2005 = vmatprep.mubr.f32.mxu1 %v186_v7  ;;  %v805_v7 = vld [vmem:[#allocation9 + $0x20] sm:$0xff] }
  0x5c   :  { %2019 = vmatpush3.msra.mxu0 %v2540_v46  ;;  %2033 = vmatpush3.msra.mxu1 %v2460_v4  ;;  %v2682_v4 = vand.u32 4294901760, %v816_v3  ;;  %3139 = vst [vmem:[#allocation18_spill] sm:$0xff] %v2745_v43  ;;  %v970_v49 = vsub.f32 %v2733_v37, %v2745_v43  ;;  %v2801_v14 = vand.u32 4294901760, %v805_v7 }
  0x5d   :  { %2006 = vmatmul.mubr.f32.gmra.mxu1 %v196_v12  ;;  %2020 = vmatprep.subr.mxu0 %v2560_v55  ;;  %v998_v12 = vsub.f32 %v2778_v60, %v2787_v1 }
  0x5e   :  { %2034 = vmatprep.subr.mxu1 %v2462_v5  ;;  %2021 = vmatpush3.msra.mxu0 %v2560_v55  ;;  %v971_v55 = vand.u32 4294901760, %v970_v49  ;;  %v801_v49 = vld [vmem:[#allocation9] sm:$0xff] }
  0x5f   :  { %2035 = vmatpush3.msra.mxu1 %v2462_v5  ;;  %2022 = vmatprep.subr.mxu0 %v2571_v59  ;;  %v815_v5 = vld [vmem:[#allocation9 + $0x70] sm:$0xff]  ;;  %v999_v18 = vand.u32 4294901760, %v998_v12 }
  0x60   :  { %2036 = vmatprep.subr.mxu1 %v2464_v9  ;;  %2023 = vmatpush3.msra.mxu0 %v2571_v59  ;;  %v2775_v59 = vand.u32 4294901760, %v2766_v53 }
  0x61   :  { %2024 = vmatprep.mubr.f32.mxu0 %v2502_v27  ;;  %2037 = vmatpush3.msra.mxu1 %v2464_v9  ;;  %v2685_v9 = vsub.f32 %v816_v3, %v2682_v4  ;;  %v2809_v3 = vand.u32 4294901760, %v2799_v13 }
  0x62   :  { %2025 = vmatmul.mubr.f32.vlgmr.msra.gmra.mxu0 %v2526_v36  ;;  %2038 = vmatprep.subr.mxu1 %v2466_v10  ;;  %3142 = vst [vmem:[#allocation21_spill] sm:$0xff] %v2775_v59  ;;  %v991_v0 = vsub.f32 %v2766_v53, %v2775_v59 }
  0x63   :  { %2039 = vmatpush3.msra.mxu1 %v2466_v10  ;;  %2027 = vmatprep.mubr.f32.mxu0 %v2555_v52  ;;  %v2687_v10 = vand.u32 4294901760, %v815_v5  ;;  %3145 = vst [vmem:[#allocation24_spill] sm:$0xff] %v2809_v3  ;;  %v1012_v26 = vsub.f32 %v2799_v13, %v2809_v3 }
  0x64   :  { %2040 = vmatprep.subr.mxu1 %v2468_v11  ;;  %2046 = vmatprep.mubr.f32.mxu1 %v2502_v27  ;;  %v992_v8 = vand.u32 4294901760, %v991_v0 }
  0x65   :  { %2041 = vmatpush3.msra.mxu1 %v2468_v11  ;;  %2052 = vmatprep.subr.mxu0 %v2682_v4  ;;  %v814_v11 = vld [vmem:[#allocation9 + $0x68] sm:$0xff]  ;;  %v2695_v19 = vsub.f32 %v815_v5, %v2687_v10  ;;  %v2812_v5 = vsub.f32 %v805_v7, %v2801_v14  ;;  %v1013_v38 = vand.u32 4294901760, %v1012_v26 }
  0x66   :  { %2028 = vmatmul.mubr.f32.gmra.mxu0 %v2562_v56  ;;  %2042 = vmatprep.subr.mxu1 %v2477_v17 }
  0x67   :  { %2043 = vmatpush3.msra.mxu1 %v2477_v17  ;;  %2053 = vmatpush3.msra.mxu0 %v2682_v4  ;;  %v2692_v17 = vand.u32 4294901760, %v2685_v9  ;;  %v2704_v23 = vand.u32 4294901760, %v2695_v19 }
  0x68   :  { %2044 = vmatprep.subr.mxu1 %v2483_v20  ;;  %2054 = vmatprep.subr.mxu0 %v2687_v10 }
  0x69   :  { %2045 = vmatpush3.msra.mxu1 %v2483_v20  ;;  %3135 = vst [vmem:[#allocation14_spill] sm:$0xff] %v2692_v17  ;;  %v2697_v20 = vand.u32 4294901760, %v814_v11  ;;  %2055 = vmatpush3.msra.mxu0 %v2687_v10  ;;  %v942_v22 = vsub.f32 %v2685_v9, %v2692_v17  ;;  %3136 = vst [vmem:[#allocation15_spill] sm:$0xff] %v2704_v23  ;;  %v949_v28 = vsub.f32 %v2695_v19, %v2704_v23 }
  0x6a   :  { %2047 = vmatmul.mubr.f32.vlgmr.msra.gmra.mxu1 %v2526_v36  ;;  %v2730_v36 = vand.u32 4294901760, %v811_v32 }
  0x6b   :  { %2049 = vmatprep.mubr.f32.mxu1 %v2555_v52  ;;  %v2707_v24 = vsub.f32 %v814_v11, %v2697_v20  ;;  %2056 = vmatprep.subr.mxu0 %v2697_v20  ;;  %v943_v27 = vand.u32 4294901760, %v942_v22  ;;  %v950_v33 = vand.u32 4294901760, %v949_v28  ;;  %v2763_v52 = vand.u32 4294901760, %v2752_v47  ;;  %v803_v22 = vld [vmem:[#allocation9 + $0x10] sm:$0xff] }
  0x6c   :  { %2057 = vmatpush3.msra.mxu0 %v2697_v20  ;;  %v2739_v41 = vsub.f32 %v811_v32, %v2730_v36  ;;  %v2814_v11 = vand.u32 4294901760, %v804_v16  ;;  %v2828_v32 = vand.u32 4294901760, %v803_v22 }
  0x6d   :  { %v2716_v29 = vand.u32 4294901760, %v2707_v24  ;;  %2058 = vmatprep.subr.mxu0 %v2709_v25  ;;  %2090 = vmatprep.subr.mxu1 %v943_v27  ;;  %3141 = vst [vmem:[#allocation20_spill] sm:$0xff] %v2763_v52  ;;  %v984_v58 = vsub.f32 %v2752_v47, %v2763_v52 }
  0x6e   :  { %2050 = vmatmul.mubr.f32.gmra.mxu1 %v2562_v56  ;;  %2059 = vmatpush3.msra.mxu0 %v2709_v25  ;;  %v2749_v46 = vand.u32 4294901760, %v2739_v41  ;;  %v807_v56 = vld [vmem:[#allocation9 + $0x30] sm:$0xff]  ;;  %v2826_v28 = vsub.f32 %v804_v16, %v2814_v11  ;;  %v2838_v44 = vsub.f32 %v803_v22, %v2828_v32 }
  0x6f   :  { %3137 = vst [vmem:[#allocation16_spill] sm:$0xff] %v2716_v29  ;;  %v956_v34 = vsub.f32 %v2707_v24, %v2716_v29  ;;  %2091 = vmatpush3.msra.mxu1 %v943_v27  ;;  %2060 = vmatprep.subr.mxu0 %v2722_v31  ;;  %v2781_v61 = vand.u32 4294901760, %v807_v56  ;;  %v985_v63 = vand.u32 4294901760, %v984_v58  ;;  %v2823_v27 = vand.u32 4294901760, %v2812_v5 }
  0x70   :  { %2092 = vmatprep.subr.mxu1 %v950_v33  ;;  %2061 = vmatpush3.msra.mxu0 %v2722_v31  ;;  %3140 = vst [vmem:[#allocation19_spill] sm:$0xff] %v2749_v46  ;;  %v977_v51 = vsub.f32 %v2739_v41, %v2749_v46  ;;  %v2835_v40 = vand.u32 4294901760, %v2826_v28  ;;  %3148 = vst [vmem:[#allocation27_spill] sm:$0xff] %v2838_v44 }
  0x71   :  { %v957_v39 = vand.u32 4294901760, %v956_v34  ;;  %2093 = vmatpush3.msra.mxu1 %v950_v33  ;;  %2062 = vmatprep.subr.mxu0 %v2730_v36  ;;  %v2793_v6 = vsub.f32 %v807_v56, %v2781_v61  ;;  %3146 = vst [vmem:[#allocation25_spill] sm:$0xff] %v2823_v27  ;;  %v802_v34 = vld [vmem:[#allocation9 + $0x8] sm:$0xff]  ;;  %v2849_v56 = vand.u32 4294901760, %v801_v49 }
  0x72   :  { %2063 = vmatpush3.msra.mxu0 %v2730_v36  ;;  %v978_v57 = vand.u32 4294901760, %v977_v51  ;;  %3147 = vst [vmem:[#allocation26_spill] sm:$0xff] %v2835_v40  ;;  %v1026_v51 = vsub.f32 %v2826_v28, %v2835_v40 }
  0x73   :  { %2094 = vmatprep.subr.mxu1 %v957_v39  ;;  %2064 = vmatprep.subr.mxu0 %v2741_v42  ;;  %v2805_v15 = vand.u32 4294901760, %v2793_v6 }
  0x74   :  { %2095 = vmatpush3.msra.mxu1 %v957_v39  ;;  %2065 = vmatpush3.msra.mxu0 %v2741_v42  ;;  %v1019_v39 = vsub.f32 %v2812_v5, %v2823_v27  ;;  %v1027_v58 = vand.u32 4294901760, %v1026_v51 }
  0x75   :  { %2096 = vmatprep.subr.mxu1 %v964_v45  ;;  %2066 = vmatprep.subr.mxu0 %v2754_v48  ;;  %3144 = vst [vmem:[#allocation23_spill] sm:$0xff] %v2805_v15  ;;  %v1005_v21 = vsub.f32 %v2793_v6, %v2805_v15 }
  0x76   :  { %2097 = vmatpush3.msra.mxu1 %v964_v45  ;;  %2067 = vmatpush3.msra.mxu0 %v2754_v48  ;;  %v2841_v45 = vand.u32 4294901760, %v802_v34  ;;  %v1020_v50 = vand.u32 4294901760, %v1019_v39 }
  0x77   :  { %2098 = vmatprep.subr.mxu1 %v971_v55  ;;  %2068 = vmatprep.subr.mxu0 %v2768_v54  ;;  %v1006_v33 = vand.u32 4294901760, %v1005_v21 }
  0x78   :  { %2099 = vmatpush3.msra.mxu1 %v971_v55  ;;  %2069 = vmatpush3.msra.mxu0 %v2768_v54  ;;  %v2847_v55 = vand.u32 4294901760, %v2838_v44 }
  0x79   :  { %2100 = vmatprep.subr.mxu1 %v978_v57  ;;  %2070 = vmatprep.subr.mxu0 %v2781_v61 }
  0x7a   :  { %2101 = vmatpush3.msra.mxu1 %v978_v57  ;;  %2071 = vmatpush3.msra.mxu0 %v2781_v61  ;;  %3149 = vst [vmem:[#allocation28_spill] sm:$0xff] %v2847_v55  ;;  %v2853_v57 = vsub.f32 %v802_v34, %v2841_v45  ;;  %v1033_v62 = vsub.f32 %v2838_v44, %v2847_v55 }
  0x7b   :  { %2102 = vmatprep.subr.mxu1 %v985_v63  ;;  %2072 = vmatprep.subr.mxu0 %v2789_v2 }
  0x7c   :  { %2103 = vmatpush3.msra.mxu1 %v985_v63  ;;  %2073 = vmatpush3.msra.mxu0 %v2789_v2  ;;  %3150 = vst [vmem:[#allocation29_spill] sm:$0xff] %v2853_v57  ;;  %v2859_v63 = vsub.f32 %v801_v49, %v2849_v56  ;;  %v2863_v0 = vand.u32 4294901760, %v2853_v57  ;;  %v1034_v7 = vand.u32 4294901760, %v1033_v62 }
  0x7d   :  { %2104 = vmatprep.subr.mxu1 %v992_v8  ;;  %2074 = vmatprep.subr.mxu0 %v2801_v14 }
  0x7e   :  { %2105 = vmatpush3.msra.mxu1 %v992_v8  ;;  %2075 = vmatpush3.msra.mxu0 %v2801_v14  ;;  %3151 = vst [vmem:[#allocation30_spill] sm:$0xff] %v2859_v63  ;;  %3152 = vst [vmem:[#allocation31_spill] sm:$0xff] %v2863_v0  ;;  %v2867_v8 = vand.u32 4294901760, %v2859_v63  ;;  %v1040_v12 = vsub.f32 %v2853_v57, %v2863_v0 }
  0x7f   :  { %2106 = vmatprep.subr.mxu1 %v999_v18  ;;  %2076 = vmatprep.subr.mxu0 %v2814_v11 }
  0x80   :  { %2107 = vmatpush3.msra.mxu1 %v999_v18  ;;  %2077 = vmatpush3.msra.mxu0 %v2814_v11  ;;  %3153 = vst [vmem:[#allocation32_spill] sm:$0xff] %v2867_v8  ;;  %v1047_v16 = vsub.f32 %v2859_v63, %v2867_v8  ;;  %v1041_v18 = vand.u32 4294901760, %v1040_v12 }
  0x81   :  { %2108 = vmatprep.subr.mxu1 %v1006_v33  ;;  %2078 = vmatprep.subr.mxu0 %v2828_v32 }
  0x82   :  { %2109 = vmatpush3.msra.mxu1 %v1006_v33  ;;  %2079 = vmatpush3.msra.mxu0 %v2828_v32  ;;  %v1048_v21 = vand.u32 4294901760, %v1047_v16 }
  0x83   :  { %2110 = vmatprep.subr.mxu1 %v1013_v38  ;;  %2080 = vmatprep.subr.mxu0 %v2841_v45 }
  0x84   :  { %2111 = vmatpush3.msra.mxu1 %v1013_v38  ;;  %2081 = vmatpush3.msra.mxu0 %v2841_v45 }
  0x85   :  { %2112 = vmatprep.subr.mxu1 %v1020_v50  ;;  %2082 = vmatprep.subr.mxu0 %v2849_v56 }
  0x86   :  { %2113 = vmatpush3.msra.mxu1 %v1020_v50  ;;  %2083 = vmatpush3.msra.mxu0 %v2849_v56 }
  0x87   :  { %2114 = vmatprep.subr.mxu1 %v1027_v58  ;;  %2128 = vmatprep.subr.mxu0 %v2685_v9 }
  0x88   :  { %2115 = vmatpush3.msra.mxu1 %v1027_v58 }
  0x89   :  { %2116 = vmatprep.subr.mxu1 %v1034_v7 }
  0x8a   :  { %2117 = vmatpush3.msra.mxu1 %v1034_v7 }
  0x8b   :  { %2118 = vmatprep.subr.mxu1 %v1041_v18 }
  0x8c   :  { %2119 = vmatpush3.msra.mxu1 %v1041_v18 }
  0x8d   :  { %2120 = vmatprep.subr.mxu1 %v1048_v21 }
  0x8e   :  { %2121 = vmatpush3.msra.mxu1 %v1048_v21 }
  0x8f   :  { %2166 = vmatprep.subr.mxu1 %v2682_v4 }
  0xfb   :  { %v1938_v22 = vpop.f32.mrf.mxu0 }
  0xfd   :  { %v170_v26 = vpop.f32.mrf.mxu0 }
 0x103   :  { %v1960_v34 = vpop.f32.mrf.mxu1 }
 0x104   :  { %v318_v18 = vadd.f32 %v1960_v34, %v1938_v22 }
 0x105   :  { %v311_v39 = vpop.f32.mrf.mxu1 }
 0x106   :  { %v312_v55 = vadd.f32 %v311_v39, %v170_v26 }
 0x108   :  { %v1941_v33 = vpop.f32.mrf.mxu0 }
 0x10a   :  { %v190_v38 = vpop.f32.mrf.mxu0 }
 0x10d   :  { %v1982_v49 = vpop.f32.mrf.mxu0 }
 0x10e   :  { %v425_v40 = vadd.f32 %v1982_v49, %v318_v18 }
 0x10f   :  { %v1963_v50 = vpop.f32.mrf.mxu1  ;;  %v417_v51 = vpop.f32.mrf.mxu0 }
 0x110   :  { %v330_v27 = vadd.f32 %v1963_v50, %v1941_v33  ;;  %v418_v3 = vadd.f32 %v417_v51, %v312_v55 }
 0x111   :  { %v323_v58 = vpop.f32.mrf.mxu1 }
 0x112   :  { %v324_v15 = vadd.f32 %v323_v58, %v190_v38 }
 0x113   :  { %v1985_v62 = vpop.f32.mrf.mxu0 }
 0x114   :  { %v439_v46 = vadd.f32 %v1985_v62, %v330_v27 }
 0x115   :  { %v431_v7 = vpop.f32.mrf.mxu0 }
 0x116   :  { %v432_v23 = vadd.f32 %v431_v7, %v324_v15 }
 0x118   :  { %v2004_v12 = vpop.f32.mrf.mxu1 }
 0x119   :  { %v528_v1 = vadd.f32 %v2004_v12, %v425_v40 }
 0x11a   :  { %v519_v16 = vpop.f32.mrf.mxu1 }
 0x11b   :  { %v520_v43 = vadd.f32 %v519_v16, %v418_v3 }
 0x11d   :  { %v2007_v0 = vpop.f32.mrf.mxu1 }
 0x11e   :  { %v544_v17 = vadd.f32 %v2007_v0, %v439_v46 }
 0x11f   :  { %v535_v59 = vpop.f32.mrf.mxu1 }
 0x120   :  { %v536_v44 = vadd.f32 %v535_v59, %v432_v23 }
 0x122   :  { %v2026_v8 = vpop.f32.mrf.mxu0 }
 0x123   :  { %v645_v35 = vadd.f32 %v2026_v8, %v528_v1 }
 0x124   :  { %v638_v21 = vpop.f32.mrf.mxu0 }
 0x125   :  { %v639_v63 = vadd.f32 %v638_v21, %v520_v43 }
 0x126   :  { %v2029_v52 = vpop.f32.mrf.mxu0 }
 0x127   :  { %v657_v26 = vadd.f32 %v2029_v52, %v544_v17 }
 0x128   :  { %v650_v22 = vpop.f32.mrf.mxu0 }
 0x129   :  { %v651_v38 = vadd.f32 %v650_v22, %v536_v44 }
 0x12a   :  { %v2048_v29 = vpop.f32.mrf.mxu1 }
 0x12b   :  { %v2876_v57 = vadd.f32 %v2048_v29, %v645_v35 }
 0x12c   :  { %v735_v34 = vpop.f32.mrf.mxu1 }
 0x12d   :  { %v1723_v33 = vmul.f32 -1.702, %v2876_v57  ;;  %v2879_v55 = vadd.f32 %v735_v34, %v639_v63 }
 0x12e   :  { %v2051_v40 = vpop.f32.mrf.mxu1 }
 0x12f   :  { %v771_v39 = vmul.f32 1.442695, %v1723_v33  ;;  %v1722_v3 = vmul.f32 -1.702, %v2879_v55  ;;  %v2882_v1 = vadd.f32 %v2051_v40, %v657_v26 }
 0x130   :  { %v747_v15 = vpop.f32.mrf.mxu1 }
 0x131   :  { %2286 = vpow2.f32 %v771_v39  ;;  %v769_v43 = vmul.f32 1.442695, %v1722_v3  ;;  %v1725_v29 = vmul.f32 -1.702, %v2882_v1  ;;  %v2885_v35 = vadd.f32 %v747_v15, %v651_v38 }
 0x133   :  { %2288 = vpow2.f32 %v769_v43  ;;  %v775_v17 = vmul.f32 1.442695, %v1725_v29  ;;  %v1724_v23 = vmul.f32 -1.702, %v2885_v35 }
 0x135   :  { %2290 = vpow2.f32 %v775_v17  ;;  %v773_v46 = vmul.f32 1.442695, %v1724_v23 }
 0x137   :  { %2292 = vpow2.f32 %v773_v46 }
 0x13e   :  { %v2287_v52 = vpop.eup %2286 }
 0x13f   :  { %v778_v59 = vadd.f32 1.0, %v2287_v52 }
 0x140   :  { %v2289_v27 = vpop.eup %2288 }
 0x141   :  { %2294 = vrcp.f32 %v778_v59  ;;  %v777_v44 = vadd.f32 1.0, %v2289_v27 }
 0x142   :  { %v2291_v63 = vpop.eup %2290 }
 0x143   :  { %2296 = vrcp.f32 %v777_v44  ;;  %v780_v0 = vadd.f32 1.0, %v2291_v63 }
 0x144   :  { %v2293_v8 = vpop.eup %2292 }
 0x145   :  { %2298 = vrcp.f32 %v780_v0  ;;  %v779_v49 = vadd.f32 1.0, %v2293_v8 }
 0x147   :  { %2300 = vrcp.f32 %v779_v49 }
 0x14e   :  { %v2295_v50 = vpop.eup %2294 }
 0x14f   :  { %v790_v51 = vmul.f32 %v2295_v50, %v2876_v57 }
 0x150   :  { %v2297_v58 = vpop.eup %2296 }
 0x151   :  { %v2889_v62 = vand.u32 4294901760, %v790_v51  ;;  %v789_v12 = vmul.f32 %v2297_v58, %v2879_v55 }
 0x152   :  { %v2299_v7 = vpop.eup %2298 }
 0x153   :  { %v2893_v16 = vsub.f32 %v790_v51, %v2889_v62  ;;  %v2895_v18 = vand.u32 4294901760, %v789_v12  ;;  %v792_v21 = vmul.f32 %v2299_v7, %v2882_v1 }
 0x154   :  { %v2301_v22 = vpop.eup %2300 }
 0x155   :  { %v910_v34 = vand.u32 4294901760, %v2893_v16  ;;  %v899_v26 = vsub.f32 %v789_v12, %v2895_v18  ;;  %v2900_v33 = vand.u32 4294901760, %v792_v21  ;;  %v791_v40 = vmul.f32 %v2301_v22, %v2885_v35  ;;  %2122 = vmatprep.mubr.f32.mxu1 %v2895_v18 }
 0x156   :  { %2123 = vmatmul.mubr.f32.vlgmr.msra.gmra.mxu1 %v2889_v62 }
 0x157   :  { %v2906_v38 = vsub.f32 %v792_v21, %v2900_v33  ;;  %v2908_v39 = vand.u32 4294901760, %v791_v40  ;;  %2167 = vmatpush3.msra.mxu1 %v2682_v4  ;;  %v900_v3 = vand.u32 4294901760, %v899_v26  ;;  %v911_v15 = vsub.f32 %v2893_v16, %v910_v34 }
 0x158   :  { %2168 = vmatprep.subr.mxu1 %v2687_v10 }
 0x159   :  { %v2916_v43 = vsub.f32 %v791_v40, %v2908_v39  ;;  %2169 = vmatpush3.msra.mxu1 %v2687_v10  ;;  %2125 = vmatprep.mubr.f32.mxu1 %v2908_v39  ;;  %v901_v29 = vsub.f32 %v899_v26, %v900_v3  ;;  %v930_v17 = vand.u32 4294901760, %v2906_v38  ;;  %v912_v52 = vand.u32 4294901760, %v911_v15 }
 0x15a   :  { %2170 = vmatprep.subr.mxu1 %v2697_v20  ;;  %2126 = vmatmul.mubr.f32.gmra.mxu1 %v2900_v33 }
 0x15b   :  { %2171 = vmatpush3.msra.mxu1 %v2697_v20  ;;  %2198 = vmatprep.mubr.f32.mxu1 %v900_v3  ;;  %v902_v23 = vand.u32 4294901760, %v901_v29  ;;  %v920_v46 = vand.u32 4294901760, %v2916_v43  ;;  %v931_v27 = vsub.f32 %v2906_v38, %v930_v17 }
 0x15c   :  { %2172 = vmatprep.subr.mxu1 %v2709_v25 }
 0x15d   :  { %2173 = vmatpush3.msra.mxu1 %v2709_v25  ;;  %2084 = vmatprep.mubr.f32.mxu0 %v902_v23  ;;  %v921_v59 = vsub.f32 %v2916_v43, %v920_v46  ;;  %v932_v63 = vand.u32 4294901760, %v931_v27 }
 0x15e   :  { %2174 = vmatprep.subr.mxu1 %v2722_v31  ;;  %2085 = vmatmul.mubr.f32.vlgmr.msra.gmra.mxu0 %v912_v52 }
 0x15f   :  { %2129 = vmatpush3.msra.mxu0 %v2685_v9  ;;  %2175 = vmatpush3.msra.mxu1 %v2722_v31  ;;  %v922_v44 = vand.u32 4294901760, %v921_v59  ;;  %v3154_v9 = vld [vmem:[#allocation27_spill] sm:$0xff] }
 0x160   :  { %2130 = vmatprep.subr.mxu0 %v2695_v19  ;;  %2176 = vmatprep.subr.mxu1 %v2730_v36 }
 0x161   :  { %2131 = vmatpush3.msra.mxu0 %v2695_v19  ;;  %2177 = vmatpush3.msra.mxu1 %v2730_v36  ;;  %v3155_v19 = vld [vmem:[#allocation29_spill] sm:$0xff] }
 0x162   :  { %2087 = vmatprep.mubr.f32.mxu0 %v922_v44  ;;  %2132 = vmatprep.subr.mxu0 %v2707_v24 }
 0x163   :  { %2178 = vmatprep.subr.mxu1 %v2741_v42  ;;  %2088 = vmatmul.mubr.f32.gmra.mxu0 %v932_v63 }
 0x164   :  { %2133 = vmatpush3.msra.mxu0 %v2707_v24  ;;  %2179 = vmatpush3.msra.mxu1 %v2741_v42  ;;  %v3159_v24 = vld [vmem:[#allocation16_spill] sm:$0xff] }
 0x165   :  { %2134 = vmatprep.subr.mxu0 %v2719_v30  ;;  %2160 = vmatprep.mubr.f32.mxu0 %v899_v26 }
 0x166   :  { %2180 = vmatprep.subr.mxu1 %v2754_v48  ;;  %2135 = vmatpush3.msra.mxu0 %v2719_v30  ;;  %v3161_v30 = vld [vmem:[#allocation18_spill] sm:$0xff] }
 0x167   :  { %2181 = vmatpush3.msra.mxu1 %v2754_v48  ;;  %2136 = vmatprep.subr.mxu0 %v2733_v37 }
 0x168   :  { %2182 = vmatprep.subr.mxu1 %v2768_v54  ;;  %2137 = vmatpush3.msra.mxu0 %v2733_v37  ;;  %v3164_v37 = vld [vmem:[#allocation21_spill] sm:$0xff] }
 0x169   :  { %2183 = vmatpush3.msra.mxu1 %v2768_v54  ;;  %2138 = vmatprep.subr.mxu0 %v2739_v41 }
 0x16a   :  { %2184 = vmatprep.subr.mxu1 %v2781_v61  ;;  %2139 = vmatpush3.msra.mxu0 %v2739_v41  ;;  %v3165_v41 = vld [vmem:[#allocation22_spill] sm:$0xff] }
 0x16b   :  { %2185 = vmatpush3.msra.mxu1 %v2781_v61  ;;  %2140 = vmatprep.subr.mxu0 %v2752_v47 }
 0x16c   :  { %2186 = vmatprep.subr.mxu1 %v2789_v2  ;;  %2141 = vmatpush3.msra.mxu0 %v2752_v47  ;;  %v3167_v47 = vld [vmem:[#allocation24_spill] sm:$0xff] }
 0x16d   :  { %2187 = vmatpush3.msra.mxu1 %v2789_v2  ;;  %2142 = vmatprep.subr.mxu0 %v2766_v53 }
 0x16e   :  { %2188 = vmatprep.subr.mxu1 %v2801_v14  ;;  %2143 = vmatpush3.msra.mxu0 %v2766_v53  ;;  %v3169_v53 = vld [vmem:[#allocation26_spill] sm:$0xff] }
 0x16f   :  { %2189 = vmatpush3.msra.mxu1 %v2801_v14  ;;  %2144 = vmatprep.subr.mxu0 %v2778_v60 }
 0x170   :  { %2190 = vmatprep.subr.mxu1 %v2814_v11  ;;  %2145 = vmatpush3.msra.mxu0 %v2778_v60  ;;  %v3171_v60 = vld [vmem:[#allocation31_spill] sm:$0xff] }
 0x171   :  { %2191 = vmatpush3.msra.mxu1 %v2814_v11  ;;  %2146 = vmatprep.subr.mxu0 %v2793_v6 }
 0x172   :  { %2192 = vmatprep.subr.mxu1 %v2828_v32  ;;  %2147 = vmatpush3.msra.mxu0 %v2793_v6 }
 0x173   :  { %2193 = vmatpush3.msra.mxu1 %v2828_v32  ;;  %2148 = vmatprep.subr.mxu0 %v2799_v13 }
 0x174   :  { %2194 = vmatprep.subr.mxu1 %v2841_v45  ;;  %2149 = vmatpush3.msra.mxu0 %v2799_v13 }
 0x175   :  { %2195 = vmatpush3.msra.mxu1 %v2841_v45  ;;  %2150 = vmatprep.subr.mxu0 %v2812_v5 }
 0x176   :  { %2196 = vmatprep.subr.mxu1 %v2849_v56  ;;  %2151 = vmatpush3.msra.mxu0 %v2812_v5 }
 0x177   :  { %2197 = vmatpush3.msra.mxu1 %v2849_v56  ;;  %2152 = vmatprep.subr.mxu0 %v2826_v28 }
 0x178   :  { %2199 = vmatmul.mubr.f32.vlgmr.msra.gmra.mxu1 %v910_v34  ;;  %2242 = vmatprep.subr.mxu1 %v2682_v4 }
 0x179   :  { %2153 = vmatpush3.msra.mxu0 %v2826_v28  ;;  %2201 = vmatprep.mubr.f32.mxu1 %v920_v46 }
 0x17a   :  { %2243 = vmatpush3.msra.mxu1 %v2682_v4  ;;  %2154 = vmatprep.subr.mxu0 %v3154_v9  ;;  %v3156_v4 = vld [vmem:[#allocation30_spill] sm:$0xff] }
 0x17b   :  { %2244 = vmatprep.subr.mxu1 %v2687_v10  ;;  %2155 = vmatpush3.msra.mxu0 %v3154_v9 }
 0x17c   :  { %2245 = vmatpush3.msra.mxu1 %v2687_v10  ;;  %2156 = vmatprep.subr.mxu0 %v3155_v19  ;;  %v3157_v10 = vld [vmem:[#allocation14_spill] sm:$0xff] }
 0x17d   :  { %2202 = vmatmul.mubr.f32.gmra.mxu1 %v930_v17  ;;  %2246 = vmatprep.subr.mxu1 %v2697_v20 }
 0x17e   :  { %2157 = vmatpush3.msra.mxu0 %v3155_v19  ;;  %2247 = vmatpush3.msra.mxu1 %v2697_v20  ;;  %v3158_v20 = vld [vmem:[#allocation15_spill] sm:$0xff] }
 0x17f   :  { %2274 = vmatprep.mubr.f32.mxu1 %v2895_v18  ;;  %2158 = vmatprep.subr.mxu0 %v3156_v4 }
 0x180   :  { %2248 = vmatprep.subr.mxu1 %v2709_v25  ;;  %2159 = vmatpush3.msra.mxu0 %v3156_v4 }
 0x181   :  { %2249 = vmatpush3.msra.mxu1 %v2709_v25  ;;  %2161 = vmatmul.mubr.f32.vlgmr.msra.gmra.mxu0 %v2893_v16  ;;  %v3160_v25 = vld [vmem:[#allocation17_spill] sm:$0xff] }
 0x182   :  { %2204 = vmatprep.subr.mxu0 %v3157_v10  ;;  %2250 = vmatprep.subr.mxu1 %v2722_v31 }
 0x183   :  { %2163 = vmatprep.mubr.f32.mxu0 %v2916_v43  ;;  %2205 = vmatpush3.msra.mxu0 %v3157_v10 }
 0x184   :  { %2251 = vmatpush3.msra.mxu1 %v2722_v31  ;;  %2206 = vmatprep.subr.mxu0 %v3158_v20  ;;  %v3162_v31 = vld [vmem:[#allocation19_spill] sm:$0xff] }
 0x185   :  { %2252 = vmatprep.subr.mxu1 %v2730_v36  ;;  %2207 = vmatpush3.msra.mxu0 %v3158_v20 }
 0x186   :  { %2253 = vmatpush3.msra.mxu1 %v2730_v36  ;;  %2164 = vmatmul.mubr.f32.gmra.mxu0 %v2906_v38  ;;  %v3163_v36 = vld [vmem:[#allocation20_spill] sm:$0xff] }
 0x187   :  { %2208 = vmatprep.subr.mxu0 %v3159_v24  ;;  %2254 = vmatprep.subr.mxu1 %v2741_v42 }
 0x188   :  { %2209 = vmatpush3.msra.mxu0 %v3159_v24  ;;  %2236 = vmatprep.mubr.f32.mxu0 %v2895_v18 }
 0x189   :  { %2255 = vmatpush3.msra.mxu1 %v2741_v42  ;;  %2210 = vmatprep.subr.mxu0 %v3160_v25  ;;  %v3166_v42 = vld [vmem:[#allocation23_spill] sm:$0xff] }
 0x18a   :  { %2256 = vmatprep.subr.mxu1 %v2754_v48  ;;  %2211 = vmatpush3.msra.mxu0 %v3160_v25 }
 0x18b   :  { %2257 = vmatpush3.msra.mxu1 %v2754_v48  ;;  %2212 = vmatprep.subr.mxu0 %v3161_v30  ;;  %v3168_v48 = vld [vmem:[#allocation25_spill] sm:$0xff] }
 0x18c   :  { %2258 = vmatprep.subr.mxu1 %v2768_v54  ;;  %2213 = vmatpush3.msra.mxu0 %v3161_v30 }
 0x18d   :  { %2259 = vmatpush3.msra.mxu1 %v2768_v54  ;;  %2214 = vmatprep.subr.mxu0 %v3162_v31  ;;  %v3170_v54 = vld [vmem:[#allocation28_spill] sm:$0xff] }
 0x18e   :  { %2260 = vmatprep.subr.mxu1 %v2781_v61  ;;  %2215 = vmatpush3.msra.mxu0 %v3162_v31 }
 0x18f   :  { %2261 = vmatpush3.msra.mxu1 %v2781_v61  ;;  %2216 = vmatprep.subr.mxu0 %v3163_v36  ;;  %v3172_v61 = vld [vmem:[#allocation32_spill] sm:$0xff] }
 0x190   :  { %2262 = vmatprep.subr.mxu1 %v2789_v2  ;;  %2217 = vmatpush3.msra.mxu0 %v3163_v36 }
 0x191   :  { %2263 = vmatpush3.msra.mxu1 %v2789_v2  ;;  %2218 = vmatprep.subr.mxu0 %v3164_v37 }
 0x192   :  { %2264 = vmatprep.subr.mxu1 %v2801_v14  ;;  %2219 = vmatpush3.msra.mxu0 %v3164_v37 }
 0x193   :  { %2265 = vmatpush3.msra.mxu1 %v2801_v14  ;;  %2220 = vmatprep.subr.mxu0 %v3165_v41 }
 0x194   :  { %2266 = vmatprep.subr.mxu1 %v2814_v11  ;;  %2221 = vmatpush3.msra.mxu0 %v3165_v41 }
 0x195   :  { %2267 = vmatpush3.msra.mxu1 %v2814_v11  ;;  %2222 = vmatprep.subr.mxu0 %v3166_v42 }
 0x196   :  { %2268 = vmatprep.subr.mxu1 %v2828_v32  ;;  %2223 = vmatpush3.msra.mxu0 %v3166_v42 }
 0x197   :  { %2269 = vmatpush3.msra.mxu1 %v2828_v32  ;;  %2224 = vmatprep.subr.mxu0 %v3167_v47 }
 0x198   :  { %2270 = vmatprep.subr.mxu1 %v2841_v45  ;;  %2225 = vmatpush3.msra.mxu0 %v3167_v47 }
 0x199   :  { %2271 = vmatpush3.msra.mxu1 %v2841_v45  ;;  %2226 = vmatprep.subr.mxu0 %v3168_v48 }
 0x19a   :  { %2272 = vmatprep.subr.mxu1 %v2849_v56  ;;  %2227 = vmatpush3.msra.mxu0 %v3168_v48 }
 0x19b   :  { %2273 = vmatpush3.msra.mxu1 %v2849_v56  ;;  %2228 = vmatprep.subr.mxu0 %v3169_v53 }
 0x19c   :  { %2275 = vmatmul.mubr.f32.vlgmr.msra.gmra.mxu1 %v2889_v62  ;;  %2229 = vmatpush3.msra.mxu0 %v3169_v53 }
 0x19d   :  { %2277 = vmatprep.mubr.f32.mxu1 %v2908_v39  ;;  %2230 = vmatprep.subr.mxu0 %v3170_v54 }
 0x19e   :  { %2231 = vmatpush3.msra.mxu0 %v3170_v54 }
 0x19f   :  { %2232 = vmatprep.subr.mxu0 %v3171_v60 }
 0x1a0   :  { %2278 = vmatmul.mubr.f32.gmra.mxu1 %v2900_v33  ;;  %2233 = vmatpush3.msra.mxu0 %v3171_v60 }
 0x1a1   :  { %2234 = vmatprep.subr.mxu0 %v3172_v61 }
 0x1a2   :  { %2235 = vmatpush3.msra.mxu0 %v3172_v61 }
 0x1a3   :  { %2237 = vmatmul.mubr.f32.vlgmr.msra.gmra.mxu0 %v2889_v62 }
 0x1a4   :  { %2239 = vmatprep.mubr.f32.mxu0 %v2908_v39 }
 0x1a7   :  { %2240 = vmatmul.mubr.f32.gmra.mxu0 %v2900_v33 }
 0x216   :  { %v2124_v2 = vpop.f32.mrf.mxu1 }
 0x218   :  { %v1085_v6 = vpop.f32.mrf.mxu1 }
 0x21a   :  { %v2127_v14 = vpop.f32.mrf.mxu1 }
 0x21c   :  { %v1097_v11 = vpop.f32.mrf.mxu1 }
 0x21e   :  { %v2086_v13 = vpop.f32.mrf.mxu0 }
 0x21f   :  { %v1092_v50 = vadd.f32 %v2124_v2, %v2086_v13 }
 0x220   :  { %v904_v5 = vpop.f32.mrf.mxu0 }
 0x221   :  { %v1086_v62 = vadd.f32 %v1085_v6, %v904_v5 }
 0x223   :  { %v2089_v28 = vpop.f32.mrf.mxu0 }
 0x224   :  { %v1104_v16 = vadd.f32 %v2127_v14, %v2089_v28 }
 0x225   :  { %v924_v45 = vpop.f32.mrf.mxu0 }
 0x226   :  { %v1098_v22 = vadd.f32 %v1097_v11, %v924_v45 }
 0x238   :  { %v2200_v32 = vpop.f32.mrf.mxu1 }
 0x23a   :  { %v1317_v56 = vpop.f32.mrf.mxu1 }
 0x23d   :  { %v2203_v8 = vpop.f32.mrf.mxu1 }
 0x23f   :  { %v1333_v51 = vpop.f32.mrf.mxu1 }
 0x241   :  { %v2162_v0 = vpop.f32.mrf.mxu0 }
 0x242   :  { %v1215_v12 = vadd.f32 %v2162_v0, %v1092_v50 }
 0x243   :  { %v1207_v49 = vpop.f32.mrf.mxu0 }
 0x244   :  { %v1208_v18 = vadd.f32 %v1207_v49, %v1086_v62  ;;  %v1326_v26 = vadd.f32 %v2200_v32, %v1215_v12 }
 0x246   :  { %v2165_v58 = vpop.f32.mrf.mxu0  ;;  %v1318_v3 = vadd.f32 %v1317_v56, %v1208_v18  ;;  %v1727_v18 = vld [vmem:[%s3095_s4] ss:$0 sm:$0xff] }
 0x247   :  { %v1229_v34 = vadd.f32 %v2165_v58, %v1104_v16 }
 0x248   :  { %v1221_v21 = vpop.f32.mrf.mxu0 }
 0x249   :  { %v1222_v38 = vadd.f32 %v1221_v21, %v1098_v22  ;;  %v1342_v17 = vadd.f32 %v2203_v8, %v1229_v34 }
 0x24b   :  { %v1334_v27 = vadd.f32 %v1333_v51, %v1222_v38 }
 0x25c   :  { %v2276_v7 = vpop.f32.mrf.mxu1 }
 0x25e   :  { %v1565_v33 = vpop.f32.mrf.mxu1 }
 0x260   :  { %v2279_v23 = vpop.f32.mrf.mxu1 }
 0x262   :  { %v1577_v10 = vpop.f32.mrf.mxu1 }
 0x263   :  { %v2238_v40 = vpop.f32.mrf.mxu0 }
 0x264   :  { %v1467_v39 = vadd.f32 %v2238_v40, %v1326_v26 }
 0x265   :  { %v1460_v15 = vpop.f32.mrf.mxu0 }
 0x266   :  { %v1572_v43 = vadd.f32 %v2276_v7, %v1467_v39  ;;  %v1461_v29 = vadd.f32 %v1460_v15, %v1318_v3  ;;  %v1726_v7 = vld [vmem:[%s3094_s3] ss:$0 sm:$0xff] }
 0x267   :  { %v2241_v46 = vpop.f32.mrf.mxu0 }
 0x268   :  { %v1566_v52 = vadd.f32 %v1565_v33, %v1461_v29  ;;  %v1479_v59 = vadd.f32 %v2241_v46, %v1342_v17  ;;  %v1592_v44 = vadd.f32 %v1572_v43, %v2876_v57 }
 0x269   :  { %v1472_v63 = vpop.f32.mrf.mxu0 }
 0x26a   :  { %v1584_v9 = vadd.f32 %v2279_v23, %v1479_v59  ;;  %v1473_v19 = vadd.f32 %v1472_v63, %v1334_v27  ;;  %1608 = vadd.xlane.f32.xlu0 %v1592_v44  ;;  %v1619_v4 = vmul.f32 %v1592_v44, %v1592_v44  ;;  %v1591_v24 = vadd.f32 %v1566_v52, %v2879_v55 }
 0x26c   :  { %v1578_v20 = vadd.f32 %v1577_v10, %v1473_v19  ;;  %1624 = vadd.xlane.f32.xlu1 %v1619_v4  ;;  %v3072_v25 = vadd.f32 %v1584_v9, %v2882_v1  ;;  %v1618_v30 = vmul.f32 %v1591_v24, %v1591_v24 }
 0x26e   :  { %1606 = vadd.xlane.f32.xlu0 %v1591_v24  ;;  %v1593_v31 = vadd.f32 %v1578_v20, %v2885_v35  ;;  %v1621_v36 = vmul.f32 %v3072_v25, %v3072_v25 }
 0x270   :  { %1612 = vadd.xlane.f32.xlu1 %v3072_v25  ;;  %v1620_v57 = vmul.f32 %v1593_v31, %v1593_v31 }
 0x272   :  { %1622 = vadd.xlane.f32.xlu0 %v1618_v30 }
 0x274   :  { %1610 = vadd.xlane.f32.xlu1 %v1593_v31 }
 0x276   :  { %1626 = vadd.xlane.f32.xlu0 %v1620_v57 }
 0x278   :  { %1628 = vadd.xlane.f32.xlu1 %v1621_v36 }
 0x2f3   :  { %v1609_v37 = vpop.xlane.xlu0 %1608 }
 0x2f4   :  { %v1615_v41 = vmul.f32 0.0078125, %v1609_v37 }
 0x2f5   :  { %v1625_v55 = vpop.xlane.xlu1 %1624 }
 0x2f6   :  { %v1635_v42 = vmul.f32 %v1615_v41, %v1615_v41  ;;  %v1631_v47 = vmul.f32 0.0078125, %v1625_v55  ;;  %v1643_v62 = vsub.f32 %v1592_v44, %v1615_v41 }
 0x2f7   :  { %v1607_v1 = vpop.xlane.xlu0 %1606 }
 0x2f8   :  { %v1639_v48 = vsub.f32 %v1631_v47, %v1635_v42  ;;  %v1614_v53 = vmul.f32 0.0078125, %v1607_v1 }
 0x2f9   :  { %v1613_v54 = vpop.xlane.xlu1 %1612 }
 0x2fa   :  { %v1647_v60 = vadd.f32 1e-05, %v1639_v48  ;;  %v1634_v35 = vmul.f32 %v1614_v53, %v1614_v53  ;;  %v1617_v13 = vmul.f32 0.0078125, %v1613_v54  ;;  %v1642_v22 = vsub.f32 %v1591_v24, %v1614_v53 }
 0x2fb   :  { %v1623_v61 = vpop.xlane.xlu0 %1622 }
 0x2fc   :  { %2302 = vrsqrt.f32 %v1647_v60  ;;  %v1630_v2 = vmul.f32 0.0078125, %v1623_v61  ;;  %v1637_v0 = vmul.f32 %v1617_v13, %v1617_v13  ;;  %v1645_v15 = vsub.f32 %v3072_v25, %v1617_v13 }
 0x2fd   :  { %v1611_v6 = vpop.xlane.xlu1 %1610 }
 0x2fe   :  { %v1638_v14 = vsub.f32 %v1630_v2, %v1634_v35  ;;  %v1616_v5 = vmul.f32 0.0078125, %v1611_v6 }
 0x2ff   :  { %v1627_v11 = vpop.xlane.xlu0 %1626 }
 0x300   :  { %v1646_v28 = vadd.f32 1e-05, %v1638_v14  ;;  %v1636_v32 = vmul.f32 %v1616_v5, %v1616_v5  ;;  %v1632_v45 = vmul.f32 0.0078125, %v1627_v11  ;;  %v1644_v38 = vsub.f32 %v1593_v31, %v1616_v5 }
 0x301   :  { %v1629_v56 = vpop.xlane.xlu1 %1628 }
 0x302   :  { %2304 = vrsqrt.f32 %v1646_v28  ;;  %v1640_v8 = vsub.f32 %v1632_v45, %v1636_v32  ;;  %v1633_v49 = vmul.f32 0.0078125, %v1629_v56 }
 0x304   :  { %v1648_v50 = vadd.f32 1e-05, %v1640_v8  ;;  %v1641_v51 = vsub.f32 %v1633_v49, %v1637_v0 }
 0x306   :  { %2306 = vrsqrt.f32 %v1648_v50  ;;  %v1649_v58 = vadd.f32 1e-05, %v1641_v51 }
 0x308   :  { %2308 = vrsqrt.f32 %v1649_v58 }
 0x309   :  { %v2303_v12 = vpop.eup %2302 }
 0x30a   :  { %v1655_v16 = vmul.f32 %v2303_v12, %v1643_v62 }
 0x30c   :  { %v1666_v21 = vmul.f32 %v1726_v7, %v1655_v16 }
 0x30e   :  { %v1677_v34 = vadd.f32 %v1727_v18, %v1666_v21 }
 0x30f   :  { %v2305_v26 = vpop.eup %2304 }
 0x310   :  { %v1681_v33 = vmul.f32 %v1677_v34, %v1677_v34  ;;  %v1654_v40 = vmul.f32 %v2305_v26, %v1642_v22 }
 0x312   :  { %1686 = vadd.xlane.f32.xlu1 %v1681_v33  ;;  %v1665_v39 = vmul.f32 %v1726_v7, %v1654_v40 }
 0x313   :  { %v2307_v3 = vpop.eup %2306 }
 0x314   :  { %v1676_v43 = vadd.f32 %v1727_v18, %v1665_v39  ;;  %v1656_v29 = vmul.f32 %v2307_v3, %v1644_v38 }
 0x315   :  { %v2309_v17 = vpop.eup %2308 }
 0x316   :  { %v1680_v23 = vmul.f32 %v1676_v43, %v1676_v43  ;;  %v1667_v46 = vmul.f32 %v1726_v7, %v1656_v29  ;;  %v1657_v52 = vmul.f32 %v2309_v17, %v1645_v15 }
 0x318   :  { %1684 = vadd.xlane.f32.xlu0 %v1680_v23  ;;  %v1678_v59 = vadd.f32 %v1727_v18, %v1667_v46  ;;  %v1668_v27 = vmul.f32 %v1726_v7, %v1657_v52 }
 0x31a   :  { %v1682_v44 = vmul.f32 %v1678_v59, %v1678_v59  ;;  %v1679_v63 = vadd.f32 %v1727_v18, %v1668_v27 }
 0x31c   :  { %1688 = vadd.xlane.f32.xlu0 %v1682_v44  ;;  %v1683_v9 = vmul.f32 %v1679_v63, %v1679_v63 }
 0x31e   :  { %1690 = vadd.xlane.f32.xlu1 %v1683_v9 }
 0x39b   :  { %v1687_v19 = vpop.xlane.xlu1 %1686 }
 0x39c   :  { %2310 = vrsqrt.f32 %v1687_v19 }
 0x3a1   :  { %v1685_v4 = vpop.xlane.xlu0 %1684 }
 0x3a2   :  { %2312 = vrsqrt.f32 %v1685_v4 }
 0x3a5   :  { %v1689_v10 = vpop.xlane.xlu0 %1688 }
 0x3a6   :  { %2314 = vrsqrt.f32 %v1689_v10 }
 0x3a7   :  { %v1691_v20 = vpop.xlane.xlu1 %1690 }
 0x3a8   :  { %2316 = vrsqrt.f32 %v1691_v20 }
 0x3a9   :  { %v2311_v24 = vpop.eup %2310 }
 0x3aa   :  { %v1697_v25 = vmul.f32 %v2311_v24, %v1677_v34 }
 0x3ac   :  { %1701 = vst [vmem:[#allocation10 + $0x8] sm:$0xff] %v1697_v25 }
 0x3af   :  { %v2313_v30 = vpop.eup %2312 }
 0x3b0   :  { %v1696_v31 = vmul.f32 %v2313_v30, %v1676_v43 }
 0x3b2   :  { %1700 = vst [vmem:[#allocation10] sm:$0xff] %v1696_v31 }
 0x3b3   :  { %v2315_v57 = vpop.eup %2314 }
 0x3b4   :  { %v1698_v36 = vmul.f32 %v2315_v57, %v1678_v59 }
 0x3b5   :  { %v2317_v37 = vpop.eup %2316 }
 0x3b6   :  { %1702 = vst [vmem:[#allocation10 + $0x10] sm:$0xff] %v1698_v36  ;;  %v1699_v41 = vmul.f32 %v2317_v37, %v1679_v63 }
 0x3b8   :  { %1703 = vst [vmem:[#allocation10 + $0x18] sm:$0xff] %v1699_v41 }
 0x3b9   :  { %1708 = vsyncadd [#allocation6], 128  ;;  %s2409_s3 = smov [#allocation10]  }
 0x3ba   :  { %s1709_s4 = sshll.u32 %s2409_s3, 4  ;;  %s1710_s4 = int_to_ptr.vmem [resolvable:$true] %s1709_s4 }
 0x3bb   :  { %s2378_s12 = scalar_lea.vmem %s1710_s4, 384  ;;  %s2382_s13 = scalar_lea.vmem %s1710_s4, 512 }
 0x3bc   :  { %p2379_p1 = scmp.ne.s32.totalorder %s1710_s4, %s2378_s12  ;;  %p2383_p2 = scmp.lt.s32.totalorder %s1710_s4, %s1710_s4 }
 0x3bd   :  { %p2384_p3 = scmp.lt.s32.totalorder %s2382_s13, %s2378_s12 }
 0x3bf   :  { %p2385_p4 = por %p2384_p3, %p2383_p2 }
 0x3c1   :  { %p2386_p5 = pnand %p2385_p4, %p2379_p1 }
 0x3c3   :  { %2389 = shalt.err (!%p2386_p5)
}
 0x3c4   :  { %1715 = dma.vmem_to_hbm [thread:$0]  %s1710_s4, 384, %s3096_s5, [#allocation6], %s2406_s23, %s2406_s23, %s2407_s24  }
 0x3c5   :  { %2402 = dma.done.wait [#allocation6], 512  }
 0x3c6   :  { %2403 = vsyncadd [#allocation6], 4294966784 }
 0x3c7   :  { %1719 = vsyncpa [#allocation5], 1 }
 0x3c8   :  { %1720 = vsyncpa [#allocation8], 1 }
 0x3c9   :  { %1721 = vsyncpa [#allocation6], 1 }

</bundles_post_ra>
